<compile_context>
chip_gen: v6e
topology: v6e:2x2x1
jax: 0.10.0
libtpu: 0.0.40
codegen_flags: <defaults>
</compile_context>

<pallas_src>
import jax
import jax.numpy as jnp
from jax.experimental import pallas as pl
from jax.experimental.pallas import tpu as pltpu


# ----------------------------- kernel body ---------------------------------

def _normalize_kernel(x_ref, sb_ref, o_ref):
    # x_ref : (br, bl) raw image tile (uint8 / bf16 / f32 ...) -> cast in-kernel
    # sb_ref: (br, 2)  fused per-row constants: [:, 0] = scale, [:, 1] = bias
    # o_ref : (br, bl) output tile
    x = x_ref[...].astype(jnp.float32)
    scale = sb_ref[:, 0:1]
    bias = sb_ref[:, 1:2]
    o_ref[...] = (x * scale + bias).astype(o_ref.dtype)


# --------------------------- layout / tiling helpers ------------------------

_BR_CAP = 256    # rows per tile  (multiple of 8/16/32 packing granularities)
_BL_CAP = 4096   # lanes per tile (32 * 128) -> 4 MiB f32 output tile


def _sublane_pack(dtype):
    # Rows per packed vreg: 8 (32-bit), 16 (16-bit), 32 (8-bit).
    return {4: 8, 2: 16, 1: 32}.get(jnp.dtype(dtype).itemsize, 8)


def _fold_factor(R, L, sub):
    """Fold spatial columns into rows, (R, L) -> (R*k, L//k), so thin-batch
    inputs (small N*C) fill packed sublanes.  Requires L//k to stay a
    lane-dense multiple of 128.  Returns k = 1 when no clean fold exists."""
    if R % sub == 0:
        return 1
    for k in range(2, 129):
        if L % k:
            continue
        cols = L // k
        if cols < 128:
            break
        if cols % 128:
            continue
        if (R * k) % sub == 0:
            return k
    return 1


def _pick_tiles(R, L):
    # Full-dim blocks only when the dimension is already small; otherwise a
    # large aligned tile + cdiv grid with partial edge blocks.
    br = R if R <= _BR_CAP else _BR_CAP   # cap is a multiple of every packing
    bl = L if L <= _BL_CAP else _BL_CAP   # cap is a multiple of 128
    return br, bl


# ------------------------------- wrapper ------------------------------------

def albumentation_wrapper_forward(image, mean, std, max_pixel_value=255.0,
                                  out_dtype=jnp.float32):
    """Equivalent of AlbumentationWrapper(A.Normalize(mean, std)).forward(image).

    image: (N, C, H, W) uint8 / bf16 / f32 — cast to f32 inside the kernel.
    mean, std: (C,)
    Returns (N, C, H, W) out_dtype:  (image / max_pixel_value - mean) / std
    (pass out_dtype=jnp.bfloat16 to roughly halve HBM write traffic).
    """
    N, C, H, W = image.shape
    R, L = N * C, H * W

    # Row-tile granularity must satisfy BOTH the input and output packing.
    sub = max(_sublane_pack(image.dtype), _sublane_pack(out_dtype))

    # Thin-batch refold: (R, L) -> (R*k, L//k), contiguous row-major reshape.
    k = _fold_factor(R, L, sub)
    R_eff, L_eff = R * k, L // k
    x2d = image.reshape(R_eff, L_eff)

    # Fused per-row constants matching the (folded) flattened layout.
    # channel of folded row r' is (r' // k) % C.
    scale_c = 1.0 / (std.astype(jnp.float32) * max_pixel_value)   # (C,)
    bias_c = -mean.astype(jnp.float32) / std.astype(jnp.float32)  # (C,)
    scale_rows = jnp.repeat(jnp.tile(scale_c, N), k)               # (R_eff,)
    bias_rows = jnp.repeat(jnp.tile(bias_c, N), k)                 # (R_eff,)
    sb_rows = jnp.stack([scale_rows, bias_rows], axis=-1)          # (R_eff, 2)

    br, bl = _pick_tiles(R_eff, L_eff)
    grid = (pl.cdiv(R_eff, br), pl.cdiv(L_eff, bl))  # partial edge blocks OK

    # Size scoped VMEM from the actual double-buffered working set
    # (constants pad lanes to 128).  Safe on v5e/v6e/v7x physical VMEM.
    in_item = jnp.dtype(image.dtype).itemsize
    out_item = jnp.dtype(out_dtype).itemsize
    tile_bytes = br * bl * (in_item + out_item) + br * 128 * 4
    vmem_limit = int(min(max(3 * tile_bytes, 16 * 2**20), 40 * 2**20))

    out2d = pl.pallas_call(
        _normalize_kernel,
        out_shape=jax.ShapeDtypeStruct((R_eff, L_eff), out_dtype),
        grid=grid,
        in_specs=[
            pl.BlockSpec((br, bl), lambda i, j: (i, j)),   # image tile
            # Constants: block index independent of the inner (j) axis, so the
            # pipeliner fetches them once per row-block.
            pl.BlockSpec((br, 2), lambda i, j: (i, 0)),
        ],
        out_specs=pl.BlockSpec((br, bl), lambda i, j: (i, j)),
        compiler_params=pltpu.CompilerParams(
            dimension_semantics=("parallel", "parallel"),
            vmem_limit_bytes=vmem_limit,
        ),
    )(x2d, sb_rows)

    return out2d.reshape(N, C, H, W)


# ------------------------------ reference -----------------------------------

def _reference(image, mean, std, max_pixel_value=255.0):
    C = image.shape[1]
    x = image.astype(jnp.float32) / max_pixel_value
    return (x - mean.reshape(1, C, 1, 1)) / std.reshape(1, C, 1, 1)


if __name__ == "__main__":
    key = jax.random.PRNGKey(0)
    k0, k1, k2 = jax.random.split(key, 3)

    # ---- small test shape from the spec: (2, 4, 16, 16), uint8 image ----
    N, C, H, W = 2, 4, 16, 16
    image = (jax.random.uniform(k0, (N, C, H, W), dtype=jnp.float32)
             * 255.0).astype(jnp.uint8)
    mean = jnp.linspace(0.4, 0.6, C, dtype=jnp.float32)
    std = jnp.linspace(0.2, 0.3, C, dtype=jnp.float32)

    out = albumentation_wrapper_forward(image, mean, std, max_pixel_value=255.0)
    out = jax.block_until_ready(out)
    ref = _reference(image, mean, std)
    assert out.shape == (N, C, H, W) and out.dtype == jnp.float32
    assert jnp.allclose(out, ref, atol=1e-5, rtol=1e-5)

    # ---- thin-batch shape: exercises the (R, L) -> (R*k, L//k) refold ----
    N2, C2, H2, W2 = 2, 3, 64, 256
    image2 = (jax.random.uniform(k1, (N2, C2, H2, W2), dtype=jnp.float32)
              * 255.0).astype(jnp.uint8)
    mean2 = jnp.array([0.485, 0.456, 0.406], dtype=jnp.float32)
    std2 = jnp.array([0.229, 0.224, 0.225], dtype=jnp.float32)

    out2 = albumentation_wrapper_forward(image2, mean2, std2)
    out2 = jax.block_until_ready(out2)
    ref2 = _reference(image2, mean2, std2)
    assert jnp.allclose(out2, ref2, atol=1e-5, rtol=1e-5)

    # ---- non-128-divisible columns: exercises cdiv grid + partial blocks ----
    N3, C3, H3, W3 = 1, 3, 24, 300   # H*W = 7200 -> bl=4096, partial edge tile
    image3 = (jax.random.uniform(k2, (N3, C3, H3, W3), dtype=jnp.float32)
              * 255.0).astype(jnp.uint8)
    out3 = albumentation_wrapper_forward(image3, mean2, std2)
    out3 = jax.block_until_ready(out3)
    ref3 = _reference(image3, mean2, std2)
    assert jnp.allclose(out3, ref3, atol=1e-5, rtol=1e-5)

    # ---- recommended low-bandwidth output path (bf16) ----
    out_bf16 = albumentation_wrapper_forward(image2, mean2, std2,
                                             out_dtype=jnp.bfloat16)
    out_bf16 = jax.block_until_ready(out_bf16)
    assert out_bf16.dtype == jnp.bfloat16
    assert jnp.allclose(out_bf16.astype(jnp.float32), ref2, atol=3e-2, rtol=3e-2)

    print("KERNEL_OK")
</pallas_src>

<mosaic_0001>
module attributes {stable_mosaic.version = 11 : i64} {
  func.func @_normalize_kernel(%arg0: i32, %arg1: i32, %arg2: memref<8x256xi8, #tpu.memory_space<vmem>>, %arg3: memref<8x2xf32, #tpu.memory_space<vmem>>, %arg4: memref<8x256xf32, #tpu.memory_space<vmem>>) attributes {dimension_semantics = [#tpu.dimension_semantics<parallel>, #tpu.dimension_semantics<parallel>], iteration_bounds = array<i64: 1, 1>, scalar_prefetch = 0 : i64, scratch_operands = 0 : i64, tpu.core_type = #tpu.core_type<tc>, window_params = [{transform_indices = @transform_0, window_bounds = array<i64: 8, 256>}, {transform_indices = @transform_1, window_bounds = array<i64: 8, 2>}, {transform_indices = @transform_2, window_bounds = array<i64: 8, 256>}]} {
    %c0 = arith.constant 0 : index
    %c0_0 = arith.constant 0 : index
    %0 = vector.load %arg2[%c0, %c0_0] : memref<8x256xi8, #tpu.memory_space<vmem>>, vector<8x256xi8>
    %1 = arith.uitofp %0 : vector<8x256xi8> to vector<8x256xf32>
    %c0_1 = arith.constant 0 : index
    %c0_2 = arith.constant 0 : index
    %2 = vector.load %arg3[%c0_1, %c0_2] : memref<8x2xf32, #tpu.memory_space<vmem>>, vector<8x1xf32>
    %c0_3 = arith.constant 0 : index
    %c1 = arith.constant 1 : index
    %3 = vector.load %arg3[%c0_3, %c1] : memref<8x2xf32, #tpu.memory_space<vmem>>, vector<8x1xf32>
    %4 = vector.broadcast %2 : vector<8x1xf32> to vector<8x256xf32>
    %5 = arith.mulf %1, %4 : vector<8x256xf32>
    %6 = vector.broadcast %3 : vector<8x1xf32> to vector<8x256xf32>
    %7 = arith.addf %5, %6 : vector<8x256xf32>
    %c0_4 = arith.constant 0 : index
    %c0_5 = arith.constant 0 : index
    %8 = vector.load %arg4[%c0_4, %c0_5] : memref<8x256xf32, #tpu.memory_space<vmem>>, vector<8x256xf32>
    tpu.vector_store %arg4[%c0_4, %c0_5], %7 {strides = array<i32>} : memref<8x256xf32, #tpu.memory_space<vmem>>, vector<8x256xf32>,
    return
  }
  func.func @transform_0(%arg0: i32, %arg1: i32) -> (i32, i32) {
    %c0_i32 = arith.constant 0 : i32
    return %arg0, %arg1 : i32, i32
  }
  func.func @transform_1(%arg0: i32, %arg1: i32) -> (i32, i32) {
    %c0_i32 = arith.constant 0 : i32
    %c0_i32_0 = arith.constant 0 : i32
    return %arg0, %c0_i32 : i32, i32
  }
  func.func @transform_2(%arg0: i32, %arg1: i32) -> (i32, i32) {
    %c0_i32 = arith.constant 0 : i32
    return %arg0, %arg1 : i32, i32
  }
}

</mosaic_0001>

<bundles_post_ra>
// kernel: tpu_custom_call.1
= control target key start
LH: loop header
LB: loop body
LE: loop exit
PB: predicated region body
PF: predicated region fallthrough
CT: control target
= control target key end

     0   :  { %v76_v1 = vmov 0   ;;  %s103_s0 = inlined_call_operand.vmem [shape: u8[8,256], index: 0, kind: input, shape index: {}]   ;;  %s104_s1 = inlined_call_operand.vmem [shape: f32[8,2], index: 1, kind: input, shape index: {}]   ;;  %s105_s2 = inlined_call_operand.hbm [shape: f32[8,256], index: 2, kind: output, shape index: {}]  }
   0x1   :  { %v19_v0 = vld [vmem:[%s104_s1] sm:$0xff]  ;;  %52 = vset.pattern.permute.xlu0 %v76_v1 }
   0x2   :  { %7 = vsyncpa [#allocation3], 0  ;;  %22 = vperm.xlu0 %52, %v19_v0   ;;  %v77_v2 = vmov 1   ;;  %v12_v3 = vld [vmem:[%s103_s0] sm:$0xf]  ;;  %s78_s13 = smov [#allocation2]  }
   0x3   :  { %v13_v4 = vunpack.c.0.s8 %v12_v3  ;;  %v14_v5 = vunpack.c.1.s8 %v12_v3  ;;  %s41_s1 = sshll.u32 %s78_s13, 4  ;;  %s42_s1 = int_to_ptr.vmem [resolvable:$true] %s41_s1 }
   0x4   :  { %s54_s14 = scalar_lea.vmem %s42_s1, 256  ;;  %p59_p1 = scmp.lt.s32.totalorder %s42_s1, %s42_s1 }
   0x5   :  { %v15_v6 = vand.u32 255, %v13_v4  ;;  %v16_v7 = vand.u32 255, %v14_v5  ;;  %p55_p0 = scmp.ne.s32.totalorder %s42_s1, %s54_s14  ;;  %p60_p2 = scmp.lt.s32.totalorder %s54_s14, %s54_s14 }
   0x6   :  { %53 = vset.pattern.permute.xlu0 %v77_v2 }
   0x7   :  { %28 = vperm.xlu0 %53, %v19_v0   ;;  %v17_v9 = vcvt.s32.f32 %v15_v6  ;;  %v18_v10 = vcvt.s32.f32 %v16_v7  ;;  %p61_p3 = por %p60_p2, %p59_p1 }
   0x9   :  { %p62_p4 = pnand %p61_p3, %p55_p0 }
  0x7d   :  { %v23_v8 = vpop.permute.xlu0 %22 }
  0x7e   :  { %v25_v11 = vmul.f32 %v23_v8, %v17_v9  ;;  %v26_v12 = vmul.f32 %v23_v8, %v18_v10 }
  0x82   :  { %v29_v13 = vpop.permute.xlu0 %28 }
  0x83   :  { %v31_v14 = vadd.f32 %v29_v13, %v25_v11  ;;  %v32_v15 = vadd.f32 %v29_v13, %v26_v12 }
  0x85   :  { %33 = vst [vmem:[#allocation2] sm:$0xff] %v31_v14  ;;  %34 = vst [vmem:[#allocation2 + $0x8] sm:$0xff] %v32_v15 }
  0x86   :  { %65 = shalt.err (!%p62_p4)
}
  0x87   :  { %44 = dma.vmem_to_hbm [thread:$0]  %s42_s1, 256, %s105_s2, [#allocation3]  }
  0x88   :  { %74 = dma.done.wait [#allocation3], 256  }
  0x89   :  { %75 = vsyncadd [#allocation3], 4294967040 }
  0x8a   :  { %48 = vsyncpa [#allocation3], 1 }

</bundles_post_ra>
